<compile_context>
chip_gen: v7x
topology: tpu7x:2x2x1
jax: 0.10.0
libtpu: 0.0.40
codegen_flags: <defaults>
</compile_context>

<pallas_src>
import math

import jax
import jax.numpy as jnp
from jax.experimental import pallas as pl
from jax.experimental.pallas import tpu as pltpu

_LANES = 128


def _round_up(x, m):
    return ((x + m - 1) // m) * m


def _cdiv(a, b):
    return (a + b - 1) // b


def _sublane_multiple(dtype):
    itemsize = jnp.dtype(dtype).itemsize
    if itemsize >= 4:
        return 8
    if itemsize == 2:
        return 16
    return 32


def _pick_config():
    """(max_block_rows, num_splits), tuned per TPU generation."""
    kind = ""
    try:
        kind = jax.devices()[0].device_kind.lower()
    except Exception:
        pass
    if "7" in kind:        # v7x: 2 TCs, 3.2 TB/s -> big tiles + 2-way split
        return 8192, 2     # 4 MiB/input tile; 2 in x 2 bufs = 16 MiB < 32 MiB scoped
    if "v6" in kind:       # v6e: 1 TC, 1.4 TB/s
        return 2048, 1     # 1 MiB/input tile
    if "v5" in kind:       # v5e / v5p: 1 TC
        return 2048, 1
    return 1024, 1         # conservative default for older / unknown parts


def _make_kernel(rows, block_rows, steps, needs_mask):
    def kernel(o_ref, t_ref, acc_ref):
        p = pl.program_id(0)
        j = pl.program_id(1)

        @pl.when(j == 0)
        def _init():
            acc_ref[...] = jnp.zeros_like(acc_ref)

        # Pure VPU hot path.  Cast mirrors torch's .float().
        o = o_ref[...].astype(jnp.float32)
        t = t_ref[...].astype(jnp.float32)
        val = jnp.abs((o - t) / t)

        if needs_mask:
            # Zero out rows beyond the real array: the partial final block
            # and (with 2 splits) a possible clamped duplicate block.
            row = jax.lax.broadcasted_iota(jnp.int32, (block_rows, _LANES), 0)
            start = (p * steps + j) * block_rows
            val = jnp.where(row < (rows - start), val, 0.0)

        # Leading-axis reduce to a single (8, 128) vreg: VALU only, no XLU.
        acc_ref[...] += val.reshape(-1, 8, _LANES).sum(axis=0)[None]

    return kernel


def l2norm_loss(out, target, *, small_input_threshold=64 * 1024):
    assert out.shape == target.shape, (out.shape, target.shape)
    total = math.prod(out.shape)

    out_flat = jnp.reshape(out, (-1,))
    tgt_flat = jnp.reshape(target, (-1,))

    sub = max(_sublane_multiple(out.dtype), _sublane_multiple(target.dtype))
    rows = total // _LANES

    # Small-input fast path: launch + grid-step overhead dominates there.
    if total <= small_input_threshold or rows < sub:
        o = out_flat.astype(jnp.float32)
        t = tgt_flat.astype(jnp.float32)
        return jnp.mean(jnp.abs((o - t) / t))

    main = rows * _LANES
    if main == total:
        out2d = jnp.reshape(out_flat, (rows, _LANES))   # free bitcast reshape
        tgt2d = jnp.reshape(tgt_flat, (rows, _LANES))
        tail_sum = jnp.float32(0.0)
    else:
        # Kernel covers the 128-aligned prefix; the <128-element remainder is
        # handled with plain jnp (far cheaper than padding both inputs).
        out2d = jnp.reshape(out_flat[:main], (rows, _LANES))
        tgt2d = jnp.reshape(tgt_flat[:main], (rows, _LANES))
        to = out_flat[main:].astype(jnp.float32)
        tt = tgt_flat[main:].astype(jnp.float32)
        tail_sum = jnp.sum(jnp.abs((to - tt) / tt))

    max_block_rows, num_splits = _pick_config()
    block_rows = max(sub, min(max_block_rows, (rows // sub) * sub))
    n_blocks = _cdiv(rows, block_rows)
    num_splits = max(1, min(num_splits, n_blocks))
    steps = _cdiv(n_blocks, num_splits)

    needs_mask = (num_splits * steps * block_rows) != rows
    needs_clamp = (num_splits * steps) > n_blocks

    def in_map(p, j):
        idx = p * steps + j
        if needs_clamp:
            # Keep the block origin in-bounds; the in-kernel row mask zeroes
            # the duplicate contribution.
            idx = jnp.minimum(idx, n_blocks - 1)
        return (idx, 0)

    kernel = _make_kernel(rows, block_rows, steps, needs_mask)

    in_bytes = (out2d.size * out2d.dtype.itemsize
                + tgt2d.size * tgt2d.dtype.itemsize)

    partials = pl.pallas_call(
        kernel,
        out_shape=jax.ShapeDtypeStruct((num_splits, 8, _LANES), jnp.float32),
        grid_spec=pltpu.PrefetchScalarGridSpec(
            num_scalar_prefetch=0,
            grid=(num_splits, steps),
            in_specs=[
                pl.BlockSpec((block_rows, _LANES), in_map),
                pl.BlockSpec((block_rows, _LANES), in_map),
            ],
            # Per-split (8,128) accumulator lives resident in VMEM across the
            # arbitrary (reduction) axis; lane-dense writeback once per split.
            out_specs=pl.BlockSpec((1, 8, _LANES), lambda p, j: (p, 0, 0)),
        ),
        compiler_params=pltpu.CompilerParams(
            dimension_semantics=("parallel", "arbitrary"),
        ),
        cost_estimate=pl.CostEstimate(
            flops=3 * main,
            transcendentals=0,
            bytes_accessed=in_bytes + num_splits * 8 * _LANES * 4,
        ),
    )(out2d, tgt2d)

    return (jnp.sum(partials) + tail_sum) / jnp.float32(total)


if __name__ == "__main__":
    key = jax.random.PRNGKey(0)
    k1, k2, k3, k4 = jax.random.split(key, 4)

    # Case 1: small NCHW regression output; force the Pallas kernel path.
    shape = (2, 4, 16, 16)
    out = jax.random.normal(k1, shape, dtype=jnp.float32)
    # Keep target away from zero (same division hazard as the torch module).
    target = jax.random.uniform(k2, shape, dtype=jnp.float32,
                                minval=0.5, maxval=1.5)
    loss = jax.block_until_ready(l2norm_loss(out, target,
                                             small_input_threshold=0))
    ref = jnp.mean(jnp.abs((out - target) / target))
    assert jnp.allclose(loss, ref, rtol=1e-5, atol=1e-6), (loss, ref)

    # Case 2: non-128-aligned element count -> kernel on the aligned prefix,
    # jnp on the <128-element tail, in-kernel masking of the partial block.
    shape2 = (3, 5, 7, 11)
    out2 = jax.random.normal(k3, shape2, dtype=jnp.float32)
    tgt2 = jax.random.uniform(k4, shape2, dtype=jnp.float32,
                              minval=0.5, maxval=1.5)
    loss2 = jax.block_until_ready(l2norm_loss(out2, tgt2,
                                              small_input_threshold=0))
    ref2 = jnp.mean(jnp.abs((out2 - tgt2) / tgt2))
    assert jnp.allclose(loss2, ref2, rtol=1e-5, atol=1e-6), (loss2, ref2)

    # Case 3: default small-input fast path (no pallas_call).
    loss3 = jax.block_until_ready(l2norm_loss(out, target))
    assert jnp.allclose(loss3, ref, rtol=1e-5, atol=1e-6), (loss3, ref)

    print("KERNEL_OK")
</pallas_src>

<mosaic_0001>
module attributes {stable_mosaic.version = 11 : i64} {
  func.func @kernel(%arg0: i32, %arg1: i32, %arg2: memref<16x128xf32, #tpu.memory_space<vmem>>, %arg3: memref<16x128xf32, #tpu.memory_space<vmem>>, %arg4: memref<1x8x128xf32, #tpu.memory_space<vmem>>) attributes {dimension_semantics = [#tpu.dimension_semantics<parallel>, #tpu.dimension_semantics<arbitrary>], iteration_bounds = array<i64: 1, 1>, scalar_prefetch = 0 : i64, scratch_operands = 0 : i64, tpu.core_type = #tpu.core_type<tc>, window_params = [{transform_indices = @transform_0, window_bounds = array<i64: 16, 128>}, {transform_indices = @transform_1, window_bounds = array<i64: 16, 128>}, {transform_indices = @transform_2, window_bounds = array<i64: 1, 8, 128>}]} {
    %c0_i32 = arith.constant 0 : i32
    %0 = arith.cmpi eq, %arg1, %c0_i32 : i32
    %1 = arith.extui %0 : i1 to i32
    %c0_i32_0 = arith.constant 0 : i32
    %2 = arith.cmpi ne, %1, %c0_i32_0 : i32
    scf.if %2 {
      %cst_10 = arith.constant 0.000000e+00 : f32
      %14 = vector.broadcast %cst_10 : f32 to vector<1x8x128xf32>
      %c0_11 = arith.constant 0 : index
      %c0_12 = arith.constant 0 : index
      %c0_13 = arith.constant 0 : index
      %15 = vector.load %arg4[%c0_11, %c0_12, %c0_13] : memref<1x8x128xf32, #tpu.memory_space<vmem>>, vector<1x8x128xf32>
      tpu.vector_store %arg4[%c0_11, %c0_12, %c0_13], %14 {strides = array<i32>} : memref<1x8x128xf32, #tpu.memory_space<vmem>>, vector<1x8x128xf32>,
    } else {
    }
    %c0 = arith.constant 0 : index
    %c0_1 = arith.constant 0 : index
    %3 = vector.load %arg2[%c0, %c0_1] : memref<16x128xf32, #tpu.memory_space<vmem>>, vector<16x128xf32>
    %c0_2 = arith.constant 0 : index
    %c0_3 = arith.constant 0 : index
    %4 = vector.load %arg3[%c0_2, %c0_3] : memref<16x128xf32, #tpu.memory_space<vmem>>, vector<16x128xf32>
    %5 = arith.subf %3, %4 : vector<16x128xf32>
    %6 = arith.divf %5, %4 : vector<16x128xf32>
    %7 = math.absf %6 : vector<16x128xf32>
    %c0_4 = arith.constant 0 : index
    %c0_5 = arith.constant 0 : index
    %c0_6 = arith.constant 0 : index
    %8 = vector.load %arg4[%c0_4, %c0_5, %c0_6] : memref<1x8x128xf32, #tpu.memory_space<vmem>>, vector<1x8x128xf32>
    %9 = vector.shape_cast %7 : vector<16x128xf32> to vector<2x8x128xf32>
    %cst = arith.constant dense<0.000000e+00> : vector<8x128xf32>
    %10 = vector.multi_reduction <add>, %9, %cst [0] : vector<2x8x128xf32> to vector<8x128xf32>
    %11 = vector.shape_cast %10 : vector<8x128xf32> to vector<1x8x128xf32>
    %12 = arith.addf %8, %11 : vector<1x8x128xf32>
    %c0_7 = arith.constant 0 : index
    %c0_8 = arith.constant 0 : index
    %c0_9 = arith.constant 0 : index
    %13 = vector.load %arg4[%c0_7, %c0_8, %c0_9] : memref<1x8x128xf32, #tpu.memory_space<vmem>>, vector<1x8x128xf32>
    tpu.vector_store %arg4[%c0_7, %c0_8, %c0_9], %12 {strides = array<i32>} : memref<1x8x128xf32, #tpu.memory_space<vmem>>, vector<1x8x128xf32>,
    return
  }
  func.func @transform_0(%arg0: i32, %arg1: i32) -> (i32, i32) {
    %c1_i32 = arith.constant 1 : i32
    %0 = arith.muli %arg0, %c1_i32 : i32
    %1 = arith.addi %0, %arg1 : i32
    %c0_i32 = arith.constant 0 : i32
    %c0_i32_0 = arith.constant 0 : i32
    return %1, %c0_i32 : i32, i32
  }
  func.func @transform_1(%arg0: i32, %arg1: i32) -> (i32, i32) {
    %c1_i32 = arith.constant 1 : i32
    %0 = arith.muli %arg0, %c1_i32 : i32
    %1 = arith.addi %0, %arg1 : i32
    %c0_i32 = arith.constant 0 : i32
    %c0_i32_0 = arith.constant 0 : i32
    return %1, %c0_i32 : i32, i32
  }
  func.func @transform_2(%arg0: i32, %arg1: i32) -> (i32, i32, i32) {
    %c0_i32 = arith.constant 0 : i32
    %c0_i32_0 = arith.constant 0 : i32
    %c0_i32_1 = arith.constant 0 : i32
    return %arg0, %c0_i32, %c0_i32_0 : i32, i32, i32
  }
}

</mosaic_0001>

<bundles_post_ra>
// kernel: tpu_custom_call.1
= control target key start
LH: loop header
LB: loop body
LE: loop exit
PB: predicated region body
PF: predicated region fallthrough
CT: control target
= control target key end

     0   :  { %7 = vsyncpa [#allocation3], 0  ;;  %s227_s0 = inlined_call_operand.hbm [shape: f32[16,128], index: 0, kind: input, shape index: {}]   ;;  %s228_s1 = inlined_call_operand.hbm [shape: f32[16,128], index: 1, kind: input, shape index: {}]   ;;  %s229_s2 = inlined_call_operand.hbm [shape: f32[1,8,128], index: 2, kind: output, shape index: {}]  }
   0x1   :  { %8 = vsyncpa [#allocation6], 0 }
   0x2   :  { %9 = vsyncpa [#allocation4], 0  ;;  %s171_s9 = smov [#allocation2]   ;;  %s99_s13 = scalar_lea.hbm %s227_s0, 256 }
   0x3   :  { %s19_s10 = sshll.u32 %s171_s9, 4  ;;  %p100_p0 = scmp.ne.s32.totalorder %s227_s0, %s99_s13  ;;  %s20_s10 = int_to_ptr.vmem [resolvable:$true] %s19_s10 }
   0x4   :  { %p103_p1 = scmp.lt.u32.totalorder %s99_s13, %s227_s0 }
   0x6   :  { %p105_p2 = pnand %p103_p1, %p100_p0 }
   0x8   :  { %108 = shalt.err (!%p105_p2)
}
   0x9   :  { %s109_s18 = scalar_lea.vmem %s20_s10, 256  ;;  %p114_p4 = scmp.lt.s32.totalorder %s20_s10, %s20_s10 }
   0xa   :  { %p110_p3 = scmp.ne.s32.totalorder %s20_s10, %s109_s18  ;;  %p115_p5 = scmp.lt.s32.totalorder %s109_s18, %s109_s18 }
   0xc   :  { %p116_p6 = por %p115_p5, %p114_p4 }
   0xe   :  { %p117_p7 = pnand %p116_p6, %p110_p3 }
  0x10   :  { %120 = shalt.err (!%p117_p7)
}
  0x11   :  { %s172_s19 = smov 128   ;;  %s173_s20 = smov 8  }
  0x12   :  { %25 = dma.hbm_to_vmem [thread:$0]  %s227_s0, 256, %s20_s10, [#allocation3], %s172_s19, %s172_s19, %s173_s20  }
  0x13   :  { %s174_s23 = smov [#allocation5]   ;;  %s121_s27 = scalar_lea.hbm %s228_s1, 256 }
  0x14   :  { %s35_s24 = sshll.u32 %s174_s23, 4  ;;  %p122_p8 = scmp.ne.s32.totalorder %s228_s1, %s121_s27  ;;  %s36_s24 = int_to_ptr.vmem [resolvable:$true] %s35_s24 }
  0x15   :  { %p125_p9 = scmp.lt.u32.totalorder %s121_s27, %s228_s1 }
  0x17   :  { %p127_p10 = pnand %p125_p9, %p122_p8 }
  0x19   :  { %130 = shalt.err (!%p127_p10)
}
  0x1a   :  { %s131_s4 = scalar_lea.vmem %s36_s24, 256  ;;  %p136_p12 = scmp.lt.s32.totalorder %s36_s24, %s36_s24 }
  0x1b   :  { %p132_p11 = scmp.ne.s32.totalorder %s36_s24, %s131_s4  ;;  %p137_p13 = scmp.lt.s32.totalorder %s131_s4, %s131_s4 }
  0x1d   :  { %p138_p0 = por %p137_p13, %p136_p12 }
  0x1f   :  { %p139_p1 = pnand %p138_p0, %p132_p11 }
  0x21   :  { %142 = shalt.err (!%p139_p1)
}
  0x22   :  { %41 = dma.hbm_to_vmem [thread:$0]  %s228_s1, 256, %s36_s24, [#allocation6], %s172_s19, %s172_s19, %s173_s20  }
  0x23   :  { %165 = dma.done.wait [#allocation3], 256  }
  0x24   :  { %166 = vsyncadd [#allocation3], 4294967040 }
  0x25   :  { %167 = dma.done.wait [#allocation6], 256  }
  0x26   :  { %168 = vsyncadd [#allocation6], 4294967040  ;;  %v59_v0 = vld [vmem:[#allocation5] sm:$0xff]  ;;  %v60_v1 = vld [vmem:[#allocation5 + $0x8] sm:$0xff]  ;;  %s175_s6 = smov [#allocation7]  }
  0x27   :  { %95 = vrcp.f32 %v59_v0  ;;  %v57_v2 = vld [vmem:[#allocation2] sm:$0xff]  ;;  %v58_v3 = vld [vmem:[#allocation2 + $0x8] sm:$0xff]  ;;  %s79_s1 = sshll.u32 %s175_s6, 4  ;;  %s80_s1 = int_to_ptr.vmem [resolvable:$true] %s79_s1 }
  0x28   :  { %97 = vrcp.f32 %v60_v1  ;;  %v61_v4 = vsub.f32 %v57_v2, %v59_v0  ;;  %v62_v5 = vsub.f32 %v58_v3, %v60_v1  ;;  %s143_s7 = scalar_lea.vmem %s80_s1, 128  ;;  %p148_p3 = scmp.lt.s32.totalorder %s80_s1, %s80_s1 }
  0x29   :  { %p144_p2 = scmp.ne.s32.totalorder %s80_s1, %s143_s7  ;;  %p149_p4 = scmp.lt.s32.totalorder %s143_s7, %s143_s7 }
  0x2b   :  { %p150_p5 = por %p149_p4, %p148_p3 }
  0x2d   :  { %p151_p6 = pnand %p150_p5, %p144_p2 }
  0x31   :  { %v96_v6 = vpop.eup %95 }
  0x32   :  { %v98_v7 = vpop.eup %97  ;;  %v64_v8 = vmul.f32 %v96_v6, %v61_v4 }
  0x33   :  { %v66_v9 = vmul.f32 %v98_v7, %v62_v5 }
  0x34   :  { %v67_v10 = vand.u32 2147483647, %v64_v8 }
  0x35   :  { %v68_v11 = vand.u32 2147483647, %v66_v9 }
  0x37   :  { %v70_v12 = vadd.f32 %v68_v11, %v67_v10 }
  0x39   :  { %72 = vst [vmem:[#allocation7] sm:$0xff] %v70_v12 }
  0x3a   :  { %154 = shalt.err (!%p151_p6)
}
  0x3b   :  { %s155_s10 = scalar_lea.hbm %s229_s2, 128 }
  0x3c   :  { %p156_p7 = scmp.ne.s32.totalorder %s229_s2, %s155_s10  ;;  %p159_p8 = scmp.lt.u32.totalorder %s155_s10, %s229_s2 }
  0x3e   :  { %p161_p9 = pnand %p159_p8, %p156_p7 }
  0x40   :  { %164 = shalt.err (!%p161_p9)
}
  0x41   :  { %82 = dma.vmem_to_hbm [thread:$0]  %s80_s1, 128, %s229_s2, [#allocation4]  }
  0x42   :  { %169 = dma.done.wait [#allocation4], 128  }
  0x43   :  { %170 = vsyncadd [#allocation4], 4294967168 }
  0x44   :  { %86 = vsyncpa [#allocation3], 1 }
  0x45   :  { %87 = vsyncpa [#allocation6], 1 }
  0x46   :  { %88 = vsyncpa [#allocation4], 1 }

</bundles_post_ra>
